<compile_context>
chip_gen: v5e
topology: v5e:2x2
jax: 0.10.0
libtpu: 0.0.40
codegen_flags: <defaults>
</compile_context>

<pallas_src>
import functools

import jax
import jax.numpy as jnp
from jax import lax
from jax.experimental import pallas as pl
from jax.experimental.pallas import tpu as pltpu


# ----------------------------- Pallas kernel --------------------------------


def _round_up(x, m):
    return (x + m - 1) // m * m


def _proj_kernel(x_ref, w_ref, scale_ref, b_ref, o_ref):
    # x_ref: (tm, H) bf16    w_ref: (tv, H) bf16
    # scale_ref: (1, tv) f32 (fix_norm 1/||w_row||, or ones)
    # b_ref: (1, tv) f32     o_ref: (tm, tv)
    acc = lax.dot_general(
        x_ref[...],
        w_ref[...],
        dimension_numbers=(((1,), (1,)), ((), ())),  # contract H of both; no w.T copy
        preferred_element_type=jnp.float32,
    )
    o_ref[...] = (acc * scale_ref[...] + b_ref[...]).astype(o_ref.dtype)


@functools.partial(jax.jit, static_argnames=("tm", "tv"))
def _vocab_projection(x2d, w_bf16, scale, bias, *, tm=256, tv=1024):
    """x2d: (M, H) float, w_bf16: (V, H) bf16, scale/bias: (V,) f32 -> (M, V) in x2d.dtype."""
    M, H = x2d.shape
    V = w_bf16.shape[0]
    out_dtype = x2d.dtype

    # Clamp tiles to the (padded) problem size; keep tm a multiple of 8 and tv of 128.
    tm = min(tm, _round_up(M, 8))
    tv = min(tv, _round_up(V, 128))
    Mp = _round_up(M, tm)
    Vp = _round_up(V, tv)

    x = x2d.astype(jnp.bfloat16)
    if Mp != M:
        x = jnp.pad(x, ((0, Mp - M), (0, 0)))

    w = w_bf16
    s2d = scale.astype(jnp.float32).reshape(1, V)
    b2d = bias.astype(jnp.float32).reshape(1, V)
    if Vp != V:
        w = jnp.pad(w, ((0, Vp - V), (0, 0)))
        s2d = jnp.pad(s2d, ((0, 0), (0, Vp - V)), constant_values=1.0)
        b2d = jnp.pad(b2d, ((0, 0), (0, Vp - V)))

    # V outer / M inner: weight, scale and bias tiles are resident across the inner
    # M loop (their index_maps depend only on j), so each weight tile is read from
    # HBM exactly once.
    grid = (Vp // tv, Mp // tm)

    out = pl.pallas_call(
        _proj_kernel,
        out_shape=jax.ShapeDtypeStruct((Mp, Vp), out_dtype),
        grid_spec=pltpu.PrefetchScalarGridSpec(
            num_scalar_prefetch=0,
            grid=grid,
            in_specs=[
                pl.BlockSpec((tm, H), lambda j, i: (i, 0)),   # hidden rows
                pl.BlockSpec((tv, H), lambda j, i: (j, 0)),   # weight tile (resident over i)
                pl.BlockSpec((1, tv), lambda j, i: (0, j)),   # fix_norm scale
                pl.BlockSpec((1, tv), lambda j, i: (0, j)),   # bias
            ],
            out_specs=pl.BlockSpec((tm, tv), lambda j, i: (i, j)),
        ),
        compiler_params=pltpu.CompilerParams(
            dimension_semantics=("parallel", "parallel"),
            vmem_limit_bytes=48 * 1024 * 1024,  # fits double-buffered tiles on v5e/v6e/v7x
        ),
    )(x, w, s2d, b2d)

    return out[:M, :V]


# ----------------------------- Module wrapper --------------------------------


class MultiGeneratorPallas:
    """JAX/Pallas re-implementation of onmt MultiGenerator.forward."""

    def __init__(self, hidden_size, vocab_sizes, fix_norm=False, seed=0):
        self.hidden_size = hidden_size
        self.fix_norm = fix_norm
        self.params = {}  # idx -> dict of params, or None for Identity
        key = jax.random.PRNGKey(seed)
        for idx in vocab_sizes:
            vocab_size = vocab_sizes[idx]
            if vocab_size > 0:
                key, kw, kb = jax.random.split(key, 3)
                std_ = hidden_size ** (-0.5)
                # nn.init.normal_(weight, 0.0, std_)
                weight = std_ * jax.random.normal(
                    kw, (vocab_size, hidden_size), dtype=jnp.float32
                )
                # nn.Linear default bias init: U(-1/sqrt(H), 1/sqrt(H))
                bound = hidden_size ** (-0.5)
                bias = jax.random.uniform(
                    kb, (vocab_size,), dtype=jnp.float32, minval=-bound, maxval=bound
                )
                # Precompute: bf16 weight copy (halves weight HBM traffic, native MXU
                # rate) and the fix_norm per-row reciprocal norm (fused in the kernel
                # epilogue instead of rewriting a normalized weight in HBM).
                inv_norm = 1.0 / jnp.maximum(
                    jnp.sqrt(jnp.sum(weight * weight, axis=-1)), 1e-12
                )
                self.params[idx] = {
                    "weight_f32": weight,
                    "weight_bf16": weight.astype(jnp.bfloat16),
                    "bias": bias,
                    "inv_norm": inv_norm.astype(jnp.float32),
                }
            else:
                self.params[idx] = None  # torch.nn.Identity()

    def forward(self, output_dicts, lang):
        lang = jnp.asarray(lang)
        assert lang.size == 1
        # TODO(synk): mirrors lang.item(); host-side scalar read selects the per-language
        # parameters (same control flow as the PyTorch ModuleDict lookup).
        index = int(lang.reshape(()))
        param = self.params[index]
        hidden = output_dicts["hidden"]  # (T, B, H)
        _ = output_dicts["target_mask"]  # carried through untouched

        if param is None:
            # Identity branch (vocab_size <= 0): logits = hidden
            output_dicts["logits"] = hidden
            return output_dicts

        V = param["bias"].shape[0]
        if self.fix_norm:
            scale = param["inv_norm"]          # (x . w_r)/||w_r|| == x . normalize(w)_r
        else:
            scale = jnp.ones((V,), jnp.float32)

        T, B, H = hidden.shape
        x2d = hidden.reshape(T * B, H)
        logits2d = _vocab_projection(x2d, param["weight_bf16"], scale, param["bias"])
        output_dicts["logits"] = logits2d.reshape(T, B, V)
        return output_dicts


# ----------------------------- Demo / self-test -------------------------------


def _reference_logits(hidden, weight, bias, fix_norm):
    w = weight
    if fix_norm:
        w = w / jnp.maximum(jnp.sqrt(jnp.sum(w * w, axis=-1, keepdims=True)), 1e-12)
    T, B, H = hidden.shape
    return (hidden.reshape(T * B, H) @ w.T + bias).reshape(T, B, -1)


if __name__ == "__main__":
    hidden_size = 32
    vocab_sizes = {0: 64, 1: 96, 2: 0}  # idx 2 -> Identity (vocab_size <= 0)

    key = jax.random.PRNGKey(0)
    k_h1, k_m1, k_h2, k_m2 = jax.random.split(key, 4)

    # --- case 1: no fix_norm, lang=1 ----------------------------------------
    gen = MultiGeneratorPallas(hidden_size, vocab_sizes, fix_norm=False, seed=0)
    T, B = 8, 2
    hidden = jax.random.normal(k_h1, (T, B, hidden_size), dtype=jnp.float32)
    target_mask = (jax.random.uniform(k_m1, (T, B)) > 0.1).astype(jnp.float32)

    out = gen.forward({"hidden": hidden, "target_mask": target_mask},
                      jnp.array([1], dtype=jnp.int32))
    logits = jax.block_until_ready(out["logits"])
    p = gen.params[1]
    ref = _reference_logits(hidden, p["weight_f32"], p["bias"], fix_norm=False)
    assert logits.shape == (T, B, vocab_sizes[1])
    assert jnp.allclose(logits, ref, atol=3e-2, rtol=3e-2), "no-fix_norm mismatch"

    # --- case 2: fix_norm, ragged M (exercises row/vocab padding), lang=0 ----
    gen_fn = MultiGeneratorPallas(hidden_size, vocab_sizes, fix_norm=True, seed=0)
    T2, B2 = 7, 3  # M = 21, not a multiple of the row tile
    hidden2 = jax.random.normal(k_h2, (T2, B2, hidden_size), dtype=jnp.float32)
    target_mask2 = (jax.random.uniform(k_m2, (T2, B2)) > 0.1).astype(jnp.float32)

    out2 = gen_fn.forward({"hidden": hidden2, "target_mask": target_mask2},
                          jnp.array([0], dtype=jnp.int32))
    logits2 = jax.block_until_ready(out2["logits"])
    p0 = gen_fn.params[0]
    ref2 = _reference_logits(hidden2, p0["weight_f32"], p0["bias"], fix_norm=True)
    assert logits2.shape == (T2, B2, vocab_sizes[0])
    assert jnp.allclose(logits2, ref2, atol=3e-2, rtol=3e-2), "fix_norm mismatch"

    # --- case 3: Identity branch (vocab_size <= 0), lang=2 --------------------
    out3 = gen.forward({"hidden": hidden, "target_mask": target_mask},
                       jnp.array([2], dtype=jnp.int32))
    assert jnp.array_equal(jax.block_until_ready(out3["logits"]), hidden)

    print("KERNEL_OK")
</pallas_src>

<mosaic_0001>
module attributes {stable_mosaic.version = 11 : i64} {
  func.func @_proj_kernel(%arg0: i32, %arg1: i32, %arg2: memref<16x32xbf16, #tpu.memory_space<vmem>>, %arg3: memref<128x32xbf16, #tpu.memory_space<vmem>>, %arg4: memref<1x128xf32, #tpu.memory_space<vmem>>, %arg5: memref<1x128xf32, #tpu.memory_space<vmem>>, %arg6: memref<16x128xf32, #tpu.memory_space<vmem>>) attributes {dimension_semantics = [#tpu.dimension_semantics<parallel>, #tpu.dimension_semantics<parallel>], iteration_bounds = array<i64: 1, 1>, scalar_prefetch = 0 : i64, scratch_operands = 0 : i64, tpu.core_type = #tpu.core_type<tc>, window_params = [{transform_indices = @transform_0, window_bounds = array<i64: 16, 32>}, {transform_indices = @transform_1, window_bounds = array<i64: 128, 32>}, {transform_indices = @transform_2, window_bounds = array<i64: 1, 128>}, {transform_indices = @transform_3, window_bounds = array<i64: 1, 128>}, {transform_indices = @transform_4, window_bounds = array<i64: 16, 128>}]} {
    %c0 = arith.constant 0 : index
    %c0_0 = arith.constant 0 : index
    %0 = vector.load %arg2[%c0, %c0_0] : memref<16x32xbf16, #tpu.memory_space<vmem>>, vector<16x32xbf16>
    %c0_1 = arith.constant 0 : index
    %c0_2 = arith.constant 0 : index
    %1 = vector.load %arg3[%c0_1, %c0_2] : memref<128x32xbf16, #tpu.memory_space<vmem>>, vector<128x32xbf16>
    %cst = arith.constant dense<0.000000e+00> : vector<16x128xf32>
    %2 = tpu.matmul %0, %1, %cst {dimension_numbers = #tpu.dot_dimension_numbers<[1], [1], [0], [0], [0, 0, 1, 0], [], []>} : vector<16x32xbf16>, vector<128x32xbf16>, vector<16x128xf32> -> vector<16x128xf32>
    %c0_3 = arith.constant 0 : index
    %c0_4 = arith.constant 0 : index
    %3 = vector.load %arg4[%c0_3, %c0_4] : memref<1x128xf32, #tpu.memory_space<vmem>>, vector<1x128xf32>
    %4 = vector.broadcast %3 : vector<1x128xf32> to vector<16x128xf32>
    %5 = arith.mulf %2, %4 : vector<16x128xf32>
    %c0_5 = arith.constant 0 : index
    %c0_6 = arith.constant 0 : index
    %6 = vector.load %arg5[%c0_5, %c0_6] : memref<1x128xf32, #tpu.memory_space<vmem>>, vector<1x128xf32>
    %7 = vector.broadcast %6 : vector<1x128xf32> to vector<16x128xf32>
    %8 = arith.addf %5, %7 : vector<16x128xf32>
    %c0_7 = arith.constant 0 : index
    %c0_8 = arith.constant 0 : index
    %9 = vector.load %arg6[%c0_7, %c0_8] : memref<16x128xf32, #tpu.memory_space<vmem>>, vector<16x128xf32>
    tpu.vector_store %arg6[%c0_7, %c0_8], %8 {strides = array<i32>} : memref<16x128xf32, #tpu.memory_space<vmem>>, vector<16x128xf32>,
    return
  }
  func.func @transform_0(%arg0: i32, %arg1: i32) -> (i32, i32) {
    %c0_i32 = arith.constant 0 : i32
    %c0_i32_0 = arith.constant 0 : i32
    return %arg1, %c0_i32 : i32, i32
  }
  func.func @transform_1(%arg0: i32, %arg1: i32) -> (i32, i32) {
    %c0_i32 = arith.constant 0 : i32
    %c0_i32_0 = arith.constant 0 : i32
    return %arg0, %c0_i32 : i32, i32
  }
  func.func @transform_2(%arg0: i32, %arg1: i32) -> (i32, i32) {
    %c0_i32 = arith.constant 0 : i32
    %c0_i32_0 = arith.constant 0 : i32
    return %c0_i32, %arg0 : i32, i32
  }
  func.func @transform_3(%arg0: i32, %arg1: i32) -> (i32, i32) {
    %c0_i32 = arith.constant 0 : i32
    %c0_i32_0 = arith.constant 0 : i32
    return %c0_i32, %arg0 : i32, i32
  }
  func.func @transform_4(%arg0: i32, %arg1: i32) -> (i32, i32) {
    %c0_i32 = arith.constant 0 : i32
    return %arg1, %arg0 : i32, i32
  }
}

</mosaic_0001>

<bundles_post_ra>
// kernel: _vocab_projection.1
= control target key start
LH: loop header
LB: loop body
LE: loop exit
PB: predicated region body
PF: predicated region fallthrough
CT: control target
= control target key end

     0   :  { %vm81_vm0 = vcmask 261120   ;;  %s305_s0 = inlined_call_operand.vmem [shape: bf16[16,32], index: 0, kind: input, shape index: {}]   ;;  %s306_s1 = inlined_call_operand.vmem [shape: bf16[128,32], index: 1, kind: input, shape index: {}]   ;;  %s307_s2 = inlined_call_operand.vmem [shape: f32[1,128], index: 2, kind: input, shape index: {}]   ;;  %s308_s3 = inlined_call_operand.vmem [shape: f32[1,128], index: 3, kind: input, shape index: {}]   ;;  %s309_s4 = inlined_call_operand.hbm [shape: f32[16,128], index: 4, kind: output, shape index: {}]  }
   0x1   :  { %v200_v0 = vld [vmem:[%s306_s1 + $0x38] sm:$0xff] }
   0x2   :  { %v107_v1 = vsel %vm81_vm0, %v200_v0, 0 }
   0x3   :  { %109 = vmatpush.bf16.xpose.msra.mxu0 %v107_v1 }
   0x4   :  { %9 = vsyncpa [#allocation3], 0  ;;  %v199_v2 = vld [vmem:[%s306_s1 + $0x30] sm:$0xff]  ;;  %v198_v4 = vld [vmem:[%s306_s1 + $0x28] sm:$0xff]  ;;  %s234_s14 = smov 8  }
   0x5   :  { %v104_v3 = vsel %vm81_vm0, %v199_v2, 0  ;;  %v101_v5 = vsel %vm81_vm0, %v198_v4, 0  ;;  %v197_v6 = vld [vmem:[%s306_s1 + $0x20] sm:$0xff]  ;;  %v196_v8 = vld [vmem:[%s306_s1 + $0x18] sm:$0xff]  ;;  %v195_v10 = vld [vmem:[%s306_s1 + $0x10] sm:$0xff] }
   0x6   :  { %v98_v7 = vsel %vm81_vm0, %v197_v6, 0  ;;  %v95_v9 = vsel %vm81_vm0, %v196_v8, 0  ;;  %v92_v11 = vsel %vm81_vm0, %v195_v10, 0  ;;  %v194_v12 = vld [vmem:[%s306_s1 + $0x8] sm:$0xff]  ;;  %v193_v14 = vld [vmem:[%s306_s1] sm:$0xff]  ;;  %s232_s1 = smov [#allocation2]  }
   0x7   :  { %v89_v13 = vsel %vm81_vm0, %v194_v12, 0  ;;  %v86_v15 = vsel %vm81_vm0, %v193_v14, 0  ;;  %v192_v16 = vld [vmem:[%s305_s0] sm:$0xff]  ;;  %s141_s11 = sshll.u32 %s232_s1, 4  ;;  %s143_s0 = sshll.u32 %s309_s4, 4  ;;  %s142_s11 = int_to_ptr.vmem [resolvable:$true] %s141_s11  ;;  %s144_s0 = int_to_ptr.hbm [resolvable:$true] %s143_s0 }
   0x8   :  { %v204_v17 = vld [vmem:[%s307_s2] ss:$0 sm:$0xff]  ;;  %s233_s2 = smov 128  }
   0x9   :  { %v205_v18 = vld [vmem:[%s308_s3] ss:$0 sm:$0xff] }
   0xb   :  { %110 = vmatpush.bf16.xpose.msra.mxu0 %v104_v3 }
  0x13   :  { %111 = vmatpush.bf16.xpose.msra.mxu0 %v101_v5 }
  0x1b   :  { %112 = vmatpush.bf16.xpose.msra.mxu0 %v98_v7 }
  0x23   :  { %113 = vmatpush.bf16.xpose.msra.mxu0 %v95_v9 }
  0x2b   :  { %114 = vmatpush.bf16.xpose.msra.mxu0 %v92_v11 }
  0x33   :  { %115 = vmatpush.bf16.xpose.msra.mxu0 %v89_v13 }
  0x3b   :  { %116 = vmatpush.bf16.xpose.msra.mxu0 %v86_v15 }
  0x42   :  { %191 = vmatmul.msk.bf16.vlgmr.msra.gmra.mxu0 %vm81_vm0, %v192_v16 }
  0xbf   :  { %v118_v19 = vpop.f32.mrf.mxu0 }
  0xc0   :  { %v127_v20 = vmul.f32 %v204_v17, %v118_v19 }
  0xc2   :  { %v133_v21 = vadd.f32 %v205_v18, %v127_v20 }
  0xc4   :  { %135 = vst [vmem:[#allocation2] sm:$0xff] %v133_v21 }
  0xc7   :  { %v120_v22 = vpop.f32.mrf.mxu0 }
  0xc8   :  { %v128_v23 = vmul.f32 %v204_v17, %v120_v22 }
  0xca   :  { %v134_v24 = vadd.f32 %v205_v18, %v128_v23 }
  0xcc   :  { %136 = vst [vmem:[#allocation2 + $0x8] sm:$0xff] %v134_v24 }
  0xcd   :  { %149 = dma.vmem_to_hbm [thread:$0]  %s142_s11, 256, %s144_s0, [#allocation3], %s233_s2, %s233_s2, %s234_s14  }
  0xce   :  { %230 = dma.done.wait [#allocation3], 256  }
  0xcf   :  { %231 = vsyncadd [#allocation3], 4294967040 }
  0xd0   :  { %154 = vsyncpa [#allocation3], 1 }

</bundles_post_ra>
